<compile_context>
chip_gen: v5e
topology: v5e:2x2
jax: 0.10.0
libtpu: 0.0.40
codegen_flags: <defaults>
</compile_context>

<pallas_src>
import jax
import jax.numpy as jnp
from jax.experimental import pallas as pl
from jax.experimental.pallas import tpu as pltpu


def _mlp_mu(x_ref, w1_ref, b1_ref, w2_ref, b2_ref, compute_dtype):
    """Shared 2-layer MLP head body: ReLU(x @ w1 + b1) @ w2 + b2, f32 accumulate."""
    x = x_ref[...].astype(compute_dtype)
    h = jnp.dot(x, w1_ref[...].astype(compute_dtype),
                preferred_element_type=jnp.float32) + b1_ref[...]
    h = jnp.maximum(h, 0.0)
    mu = jnp.dot(h.astype(compute_dtype), w2_ref[...].astype(compute_dtype),
                 preferred_element_type=jnp.float32) + b2_ref[...]
    return mu


def _actor_sample_kernel(x_ref, w1_ref, b1_ref, w2_ref, b2_ref, std_ref, eps_ref,
                         out_ref, *, compute_dtype):
    """Stochastic path: out = [mu | mu + std*eps] as one lane-contiguous block."""
    mu = _mlp_mu(x_ref, w1_ref, b1_ref, w2_ref, b2_ref, compute_dtype)
    act = mu + std_ref[...] * eps_ref[...]
    out_ref[...] = jnp.concatenate([mu, act], axis=-1)


def _actor_mu_kernel(x_ref, w1_ref, b1_ref, w2_ref, b2_ref, mu_ref, *, compute_dtype):
    """Deterministic path: only mu (action == dist.mode() == mu)."""
    mu_ref[...] = _mlp_mu(x_ref, w1_ref, b1_ref, w2_ref, b2_ref, compute_dtype)


def actor_forward(states_encoding, params, eps=None, *, deterministic=False,
                  tile_b=256, compute_dtype=jnp.float32):
    """Pallas-backed equivalent of ContiniousActorNetwork.forward with
    encodings_feeded=True. Returns (action, (mu, std), rnn_hxs=None)."""
    import functools

    w1, b1, w2, b2, logstd = params
    B, D_in = states_encoding.shape
    H = w1.shape[1]
    A = w2.shape[1]

    TILE_B = min(B, tile_b)
    grid = (pl.cdiv(B, TILE_B),)

    # Parameter rows broadcast over the batch (sublane) axis inside the kernel.
    b1_row = b1.reshape(1, H).astype(jnp.float32)
    b2_row = b2.reshape(1, A).astype(jnp.float32)
    std = jnp.exp(logstd)                         # computed once, outside the kernel
    std_row = std.reshape(1, A).astype(jnp.float32)

    # Resident (constant index_map) specs for parameters; blocked specs for batch data.
    def const_spec(shape):
        return pl.BlockSpec(shape, lambda i: (0, 0))

    x_spec = pl.BlockSpec((TILE_B, D_in), lambda i: (i, 0))
    param_specs = [const_spec(w1.shape), const_spec((1, H)),
                   const_spec(w2.shape), const_spec((1, A))]

    cparams = pltpu.CompilerParams(dimension_semantics=("parallel",))

    if deterministic:
        mu = pl.pallas_call(
            functools.partial(_actor_mu_kernel, compute_dtype=compute_dtype),
            out_shape=jax.ShapeDtypeStruct((B, A), jnp.float32),
            grid=grid,
            in_specs=[x_spec] + param_specs,
            out_specs=pl.BlockSpec((TILE_B, A), lambda i: (i, 0)),
            compiler_params=cparams,
        )(states_encoding, w1, b1_row, w2, b2_row)
        return mu, (mu, std), None

    assert eps is not None, "stochastic forward requires eps ~ N(0, 1) of shape (B, A)"
    out = pl.pallas_call(
        functools.partial(_actor_sample_kernel, compute_dtype=compute_dtype),
        out_shape=jax.ShapeDtypeStruct((B, 2 * A), jnp.float32),
        grid=grid,
        in_specs=[x_spec] + param_specs
                 + [const_spec((1, A)),                              # std row
                    pl.BlockSpec((TILE_B, A), lambda i: (i, 0))],    # eps
        out_specs=pl.BlockSpec((TILE_B, 2 * A), lambda i: (i, 0)),
        compiler_params=cparams,
    )(states_encoding, w1, b1_row, w2, b2_row, std_row, eps)

    mu = out[:, :A]
    action = out[:, A:]
    return action, (mu, std), None


def make_params(key, input_size, hidden_size, action_size):
    """Deterministic init mirroring nn.Linear (uniform +/- 1/sqrt(fan_in)) and
    logstd = zeros, all float32."""
    k1, k2, k3, k4 = jax.random.split(key, 4)
    lim1 = 1.0 / jnp.sqrt(input_size)
    lim2 = 1.0 / jnp.sqrt(hidden_size)
    w1 = jax.random.uniform(k1, (input_size, hidden_size), jnp.float32, -lim1, lim1)
    b1 = jax.random.uniform(k2, (hidden_size,), jnp.float32, -lim1, lim1)
    w2 = jax.random.uniform(k3, (hidden_size, action_size), jnp.float32, -lim2, lim2)
    b2 = jax.random.uniform(k4, (action_size,), jnp.float32, -lim2, lim2)
    logstd = jnp.zeros((action_size,), jnp.float32)
    return (w1, b1, w2, b2, logstd)


if __name__ == "__main__":
    key = jax.random.PRNGKey(0)
    k_param, k_state, k_eps = jax.random.split(key, 3)

    # Small shapes consistent with the module; B=32 with TILE_B=8 exercises a
    # 4-step batch grid with resident weights.
    B, D_IN, HIDDEN, ACTION = 32, 32, 32, 8
    TILE_B = 8

    params = make_params(k_param, D_IN, HIDDEN, ACTION)
    states_encoding = jax.random.normal(k_state, (B, D_IN), jnp.float32)
    eps = jax.random.normal(k_eps, (B, ACTION), jnp.float32)   # noise for dist.sample()

    # stochastic forward (default path: action = dist.sample())
    action, (mu, std), rnn_hxs = actor_forward(states_encoding, params, eps,
                                               deterministic=False, tile_b=TILE_B)
    # deterministic forward (action = dist.mode() = mu); no eps, no sample output
    action_det, (mu_d, _), _ = actor_forward(states_encoding, params,
                                             deterministic=True, tile_b=TILE_B)

    jax.block_until_ready((action, mu, action_det, mu_d))

    # pure-JAX reference check
    w1, b1, w2, b2, logstd = params
    h_ref = jnp.maximum(states_encoding @ w1 + b1, 0.0)
    mu_ref = h_ref @ w2 + b2
    act_ref = mu_ref + jnp.exp(logstd) * eps
    assert jnp.allclose(mu, mu_ref, atol=1e-5), "mu mismatch"
    assert jnp.allclose(action, act_ref, atol=1e-5), "sampled action mismatch"
    assert jnp.allclose(action_det, mu_ref, atol=1e-5), "deterministic action mismatch"
    assert jnp.allclose(mu_d, mu_ref, atol=1e-5), "deterministic mu mismatch"
    assert jnp.allclose(std, jnp.exp(logstd)), "std mismatch"

    print("KERNEL_OK")
</pallas_src>

<mosaic_0001>
module attributes {stable_mosaic.version = 11 : i64} {
  func.func @_actor_sample_kernel(%arg0: i32, %arg1: memref<8x32xf32, #tpu.memory_space<vmem>>, %arg2: memref<32x32xf32, #tpu.memory_space<vmem>>, %arg3: memref<1x32xf32, #tpu.memory_space<vmem>>, %arg4: memref<32x8xf32, #tpu.memory_space<vmem>>, %arg5: memref<1x8xf32, #tpu.memory_space<vmem>>, %arg6: memref<1x8xf32, #tpu.memory_space<vmem>>, %arg7: memref<8x8xf32, #tpu.memory_space<vmem>>, %arg8: memref<8x16xf32, #tpu.memory_space<vmem>>) attributes {dimension_semantics = [#tpu.dimension_semantics<parallel>], iteration_bounds = array<i64: 4>, scalar_prefetch = 0 : i64, scratch_operands = 0 : i64, tpu.core_type = #tpu.core_type<tc>, window_params = [{transform_indices = @transform_0, window_bounds = array<i64: 8, 32>}, {pipeline_mode = #tpu.pipeline_mode<synchronous>, transform_indices = @transform_1, window_bounds = array<i64: 32, 32>}, {pipeline_mode = #tpu.pipeline_mode<synchronous>, transform_indices = @transform_2, window_bounds = array<i64: 1, 32>}, {pipeline_mode = #tpu.pipeline_mode<synchronous>, transform_indices = @transform_3, window_bounds = array<i64: 32, 8>}, {pipeline_mode = #tpu.pipeline_mode<synchronous>, transform_indices = @transform_4, window_bounds = array<i64: 1, 8>}, {pipeline_mode = #tpu.pipeline_mode<synchronous>, transform_indices = @transform_5, window_bounds = array<i64: 1, 8>}, {transform_indices = @transform_6, window_bounds = array<i64: 8, 8>}, {transform_indices = @transform_7, window_bounds = array<i64: 8, 16>}]} {
    %c0 = arith.constant 0 : index
    %c0_0 = arith.constant 0 : index
    %0 = vector.load %arg1[%c0, %c0_0] : memref<8x32xf32, #tpu.memory_space<vmem>>, vector<8x32xf32>
    %c0_1 = arith.constant 0 : index
    %c0_2 = arith.constant 0 : index
    %1 = vector.load %arg2[%c0_1, %c0_2] : memref<32x32xf32, #tpu.memory_space<vmem>>, vector<32x32xf32>
    %cst = arith.constant dense<0.000000e+00> : vector<8x32xf32>
    %2 = tpu.matmul %0, %1, %cst {dimension_numbers = #tpu.dot_dimension_numbers<[1], [0], [0], [1], [0, 0, 1, 1], [], []>} : vector<8x32xf32>, vector<32x32xf32>, vector<8x32xf32> -> vector<8x32xf32>
    %c0_3 = arith.constant 0 : index
    %c0_4 = arith.constant 0 : index
    %3 = vector.load %arg3[%c0_3, %c0_4] : memref<1x32xf32, #tpu.memory_space<vmem>>, vector<1x32xf32>
    %4 = vector.broadcast %3 : vector<1x32xf32> to vector<8x32xf32>
    %5 = arith.addf %2, %4 : vector<8x32xf32>
    %cst_5 = arith.constant 0.000000e+00 : f32
    %6 = vector.broadcast %cst_5 : f32 to vector<8x32xf32>
    %7 = arith.maximumf %5, %6 : vector<8x32xf32>
    %c0_6 = arith.constant 0 : index
    %c0_7 = arith.constant 0 : index
    %8 = vector.load %arg4[%c0_6, %c0_7] : memref<32x8xf32, #tpu.memory_space<vmem>>, vector<32x8xf32>
    %cst_8 = arith.constant dense<0.000000e+00> : vector<8x8xf32>
    %9 = tpu.matmul %7, %8, %cst_8 {dimension_numbers = #tpu.dot_dimension_numbers<[1], [0], [0], [1], [0, 0, 1, 1], [], []>} : vector<8x32xf32>, vector<32x8xf32>, vector<8x8xf32> -> vector<8x8xf32>
    %c0_9 = arith.constant 0 : index
    %c0_10 = arith.constant 0 : index
    %10 = vector.load %arg5[%c0_9, %c0_10] : memref<1x8xf32, #tpu.memory_space<vmem>>, vector<1x8xf32>
    %11 = vector.broadcast %10 : vector<1x8xf32> to vector<8x8xf32>
    %12 = arith.addf %9, %11 : vector<8x8xf32>
    %c0_11 = arith.constant 0 : index
    %c0_12 = arith.constant 0 : index
    %13 = vector.load %arg6[%c0_11, %c0_12] : memref<1x8xf32, #tpu.memory_space<vmem>>, vector<1x8xf32>
    %c0_13 = arith.constant 0 : index
    %c0_14 = arith.constant 0 : index
    %14 = vector.load %arg7[%c0_13, %c0_14] : memref<8x8xf32, #tpu.memory_space<vmem>>, vector<8x8xf32>
    %15 = vector.broadcast %13 : vector<1x8xf32> to vector<8x8xf32>
    %16 = arith.mulf %15, %14 : vector<8x8xf32>
    %17 = arith.addf %12, %16 : vector<8x8xf32>
    %18 = tpu.concatenate %12, %17 in 1 : vector<8x8xf32>, vector<8x8xf32> -> vector<8x16xf32>
    %c0_15 = arith.constant 0 : index
    %c0_16 = arith.constant 0 : index
    %19 = vector.load %arg8[%c0_15, %c0_16] : memref<8x16xf32, #tpu.memory_space<vmem>>, vector<8x16xf32>
    tpu.vector_store %arg8[%c0_15, %c0_16], %18 {strides = array<i32>} : memref<8x16xf32, #tpu.memory_space<vmem>>, vector<8x16xf32>,
    return
  }
  func.func @transform_0(%arg0: i32) -> (i32, i32) {
    %c0_i32 = arith.constant 0 : i32
    %c0_i32_0 = arith.constant 0 : i32
    return %arg0, %c0_i32 : i32, i32
  }
  func.func @transform_1(%arg0: i32) -> (i32, i32) {
    %c0_i32 = arith.constant 0 : i32
    %c0_i32_0 = arith.constant 0 : i32
    %c0_i32_1 = arith.constant 0 : i32
    return %c0_i32, %c0_i32_0 : i32, i32
  }
  func.func @transform_2(%arg0: i32) -> (i32, i32) {
    %c0_i32 = arith.constant 0 : i32
    %c0_i32_0 = arith.constant 0 : i32
    %c0_i32_1 = arith.constant 0 : i32
    return %c0_i32, %c0_i32_0 : i32, i32
  }
  func.func @transform_3(%arg0: i32) -> (i32, i32) {
    %c0_i32 = arith.constant 0 : i32
    %c0_i32_0 = arith.constant 0 : i32
    %c0_i32_1 = arith.constant 0 : i32
    return %c0_i32, %c0_i32_0 : i32, i32
  }
  func.func @transform_4(%arg0: i32) -> (i32, i32) {
    %c0_i32 = arith.constant 0 : i32
    %c0_i32_0 = arith.constant 0 : i32
    %c0_i32_1 = arith.constant 0 : i32
    return %c0_i32, %c0_i32_0 : i32, i32
  }
  func.func @transform_5(%arg0: i32) -> (i32, i32) {
    %c0_i32 = arith.constant 0 : i32
    %c0_i32_0 = arith.constant 0 : i32
    %c0_i32_1 = arith.constant 0 : i32
    return %c0_i32, %c0_i32_0 : i32, i32
  }
  func.func @transform_6(%arg0: i32) -> (i32, i32) {
    %c0_i32 = arith.constant 0 : i32
    %c0_i32_0 = arith.constant 0 : i32
    return %arg0, %c0_i32 : i32, i32
  }
  func.func @transform_7(%arg0: i32) -> (i32, i32) {
    %c0_i32 = arith.constant 0 : i32
    %c0_i32_0 = arith.constant 0 : i32
    return %arg0, %c0_i32 : i32, i32
  }
}

</mosaic_0001>

<bundles_post_ra>
// kernel: tpu_custom_call.1
= control target key start
LH: loop header
LB: loop body
LE: loop exit
PB: predicated region body
PF: predicated region fallthrough
CT: control target
= control target key end

     0   :  { %s509_s24 = smov 0   ;;  %s567_s0 = inlined_call_operand.vmem [shape: f32[32,32], index: 0, kind: input, shape index: {}]   ;;  %s568_s1 = inlined_call_operand.vmem [shape: f32[32,32], index: 1, kind: input, shape index: {}]   ;;  %s569_s2 = inlined_call_operand.vmem [shape: f32[1,32], index: 2, kind: input, shape index: {}]   ;;  %s570_s3 = inlined_call_operand.vmem [shape: f32[32,8], index: 3, kind: input, shape index: {}]   ;;  %s571_s4 = inlined_call_operand.vmem [shape: f32[1,8], index: 4, kind: input, shape index: {}]   ;;  %s572_s5 = inlined_call_operand.vmem [shape: f32[1,8], index: 5, kind: input, shape index: {}]   ;;  %s573_s6 = inlined_call_operand.vmem [shape: f32[32,8], index: 6, kind: input, shape index: {}]   ;;  %s574_s7 = inlined_call_operand.vmem [shape: f32[32,16], index: 7, kind: output, shape index: {}]  }
   0x1 LB: > { %s436_s25 = sadd.s32 4294967295, %s466_s24   ;;  %p440_p0 = scmp.ge.s32.totalorder %s466_s24, 1  ;;  %s466_s24 = sphi %s509_s24, %s17_s24  }
   0x2   : > { %p245_p1 = scmp.lt.s32.totalorder %s466_s24, 5 }
   0x4   : > { %p246_p2 = pnand %p440_p0, %p245_p1 }
   0x5   : > { %p279_p3 = scmp.lt.s32.totalorder (!%p246_p2), %s436_s25, 3  ;;  %s468_s10 = smov (!%p246_p2), 8  }
   0x6   : > { %249 = sbr.rel (%p246_p2) target bundleno = 396 (0x18c), region = 48 }
   0xb   : > { %v295_v0 = vld [vmem:[%s568_s1 + $0x18] sm:$0xff]  ;;  %v294_v1 = vld [vmem:[%s568_s1 + $0x10] sm:$0xff]  ;;  %v293_v3 = vld [vmem:[%s568_s1 + $0x8] sm:$0xff]  ;;  %s576_s25 = smov (!%p279_p3, %s436_s25), 3  ;;  %vm300_vm0 = vcmask 261120   ;;  %vm367_vm1 = vcmask 64512  }
   0xc   : > { %316 = vmatpush.msra.mxu0 %v295_v0  ;;  %v328_v2 = vld [vmem:[%s570_s3 + $0x18] sm:$0xff]  ;;  %v292_v4 = vld [vmem:[%s568_s1] sm:$0xff]  ;;  %s532_s13 = sshll.u32 %s576_s25, 3  ;;  %v327_v6 = vld [vmem:[%s570_s3 + $0x10] sm:$0xff]  ;;  %vm369_vm2 = vcmask 130048  }
   0xd   : > { %348 = vmatpush.msra.mxu1 %v328_v2  ;;  %s282_s16 = scalar_lea.vmem %s567_s0, %s532_s13  ;;  %v326_v7 = vld [vmem:[%s570_s3 + $0x8] sm:$0xff]  ;;  %v325_v8 = vld [vmem:[%s570_s3] sm:$0xff]  ;;  %s286_s28 = scalar_lea.vmem %s573_s6, %s532_s13 }
   0xe   : > { %317 = vmatpush.msra.mxu0 %v294_v1  ;;  %v291_v5 = vld [vmem:[%s282_s16] sm:$0xff]  ;;  %s290_s14 = scalar_lea.vmem %s574_s7, %s532_s13 }
   0xf   : > { %349 = vmatpush.msra.mxu1 %v327_v6  ;;  %v457_v9 = vld [vmem:[%s569_s2] ss:$0 sm:$0xff] }
  0x10   : > { %318 = vmatpush.msra.mxu0 %v293_v3  ;;  %v459_v13 = vld [vmem:[%s572_s5] ss:$0 sm:$0xff] }
  0x11   : > { %350 = vmatpush.msra.mxu1 %v326_v7  ;;  %v357_v14 = vld [vmem:[%s286_s28] sm:$0xff] }
  0x12   : > { %319 = vmatpush.msra.mxu0 %v292_v4  ;;  %v458_v15 = vld [vmem:[%s571_s4] ss:$0 sm:$0xff]  ;;  %v361_v16 = vmul.f32 %v459_v13, %v357_v14 }
  0x13   : > { %444 = vmatmul.msk.f32.vlgmr.msra.gmra.mxu0 %vm300_vm0, %v291_v5  ;;  %351 = vmatpush.msra.mxu1 %v325_v8 }
  0x90   : > { %v321_v10 = vpop.f32.mrf.mxu0 }
  0x91   : > { %v322_v11 = vadd.f32 %v457_v9, %v321_v10 }
  0x93   : > { %v324_v12 = vmax.f32 %v322_v11, 0.0 }
  0x95   : > { %445 = vmatmul.msk.f32.vlgmr.msra.gmra.mxu1 %vm300_vm0, %v324_v12 }
 0x112   : > { %v353_v17 = vpop.f32.mrf.mxu1 }
 0x113   : > { %v354_v18 = vadd.f32 %v458_v15, %v353_v17 }
 0x115   : > { %v362_v19 = vadd.f32 %v361_v16, %v354_v18 }
 0x117   : > { %364 = vrot.lane.b32.xlu0 %v362_v19, %s468_s10 }
 0x189   : > { %v365_v20 = vpop.permute.xlu0 %364 }
 0x18a   : > { %v368_v21 = vsel %vm367_vm1, %v354_v18, %v365_v20 }
 0x18b   : > { %370 = vst.msk [vmem:[%s290_s14] sm:$0xff] %vm369_vm2, %v368_v21 }
 0x18c PF: > { %s17_s24 = sadd.s32 1, %s466_s24  }
 0x18d   : > { %p14_p4 = scmp.ge.s32.totalorder %s17_s24, 6  }
 0x18f   :  { %16 = sbr.rel (!%p14_p4) target bundleno = 1 (0x1), region = 81 }

</bundles_post_ra>
